<compile_context>
chip_gen: v6e
topology: v6e:2x2x1
jax: 0.10.0
libtpu: 0.0.40
codegen_flags: <defaults>
</compile_context>

<pallas_src>
import functools

import jax
import jax.numpy as jnp
from jax.experimental import pallas as pl
from jax.experimental.pallas import tpu as pltpu  # noqa: F401  (TPU backend)


def _make_fused_mlp_kernel(layer_sizes, activations):
    """Kernel computing the whole MLP from packed weight / bias blocks.

    Refs: x (batch, s0), w_packed (L, max_fi, max_fo),
          b_packed (L, 1, max_fo), out (batch, sL).
    Each layer's exact (fan_in, fan_out) sub-block is read with static slices,
    so padded regions of the packed arrays are never used.
    """
    num_layers = len(layer_sizes) - 1

    def kernel(x_ref, w_ref, b_ref, o_ref):
        y = x_ref[...]                                   # (batch, s0)
        for li in range(num_layers):
            fi, fo = layer_sizes[li], layer_sizes[li + 1]
            w = w_ref[li][:fi, :fo]                      # static sub-block, (fi, fo)
            b = b_ref[li][:, :fo]                        # (1, fo) -> row-broadcast
            y = jnp.dot(y, w, preferred_element_type=jnp.float32) + b
            act = activations[li]
            if act == "ReLU":
                y = jnp.maximum(y, 0.0)
            elif act == "sigmoid":
                y = jax.nn.sigmoid(y)                    # EUP transcendental
            elif act == "tanh":
                y = jnp.tanh(y)                          # EUP transcendental
            elif act == "Affine":
                pass                                     # identity
            else:
                raise NotImplementedError(act)
        o_ref[...] = y.astype(o_ref.dtype)

    return kernel


def _fused_mlp_pallas(x, w_packed, b_packed, layer_sizes, activations):
    """Single grid-less pallas_call over the whole (packed) network."""
    batch = x.shape[0]
    out_features = layer_sizes[-1]
    kernel = _make_fused_mlp_kernel(layer_sizes, activations)
    return pl.pallas_call(
        kernel,
        out_shape=jax.ShapeDtypeStruct((batch, out_features), x.dtype),
        in_specs=[
            pl.BlockSpec(x.shape, lambda: (0, 0)),
            pl.BlockSpec(w_packed.shape, lambda: (0, 0, 0)),
            pl.BlockSpec(b_packed.shape, lambda: (0, 0, 0)),
        ],
        out_specs=pl.BlockSpec((batch, out_features), lambda: (0, 0)),
    )(x, w_packed, b_packed)


@functools.partial(jax.jit, static_argnames=("layer_sizes", "activations"))
def mlp_forward(x, w_packed, b_packed, layer_sizes, activations):
    """jit-compiled forward: exactly one pallas_call, no pad / slice ops."""
    return _fused_mlp_pallas(x, w_packed, b_packed, layer_sizes, activations)


class NeuralNetworkPallas:
    """JAX/Pallas port of the PyTorch NeuralNetwork MLP.

    nn.Linear weights (out, in) are stored transposed as (in, out) so the
    kernel computes y = x @ W + b on the MXU.  All layers are packed once at
    init into a single weight block and a single bias block.
    """

    def __init__(self, state_size, control_size, hidden_size_list,
                 activation_list, key):
        assert len(hidden_size_list) + 1 == len(activation_list)
        sizes = [state_size] + list(hidden_size_list) + [control_size]
        self.layer_sizes = tuple(sizes)
        self.activations = tuple(activation_list)
        self.state_size = state_size
        self.control_size = control_size

        num_layers = len(sizes) - 1
        max_fi = max(sizes[:-1])
        max_fo = max(sizes[1:])

        w_packed = jnp.zeros((num_layers, max_fi, max_fo), jnp.float32)
        b_packed = jnp.zeros((num_layers, 1, max_fo), jnp.float32)

        self.params = []  # unpadded (for reference / inspection)
        for i in range(num_layers):
            fan_in, fan_out = sizes[i], sizes[i + 1]
            key, kw, kb = jax.random.split(key, 3)
            # Deterministic init mimicking nn.Linear's U(-1/sqrt(fan_in), ...).
            bound = 1.0 / (float(fan_in) ** 0.5)
            w = jax.random.uniform(kw, (fan_in, fan_out), jnp.float32,
                                   -bound, bound)
            b = jax.random.uniform(kb, (fan_out,), jnp.float32, -bound, bound)
            self.params.append((w, b))
            w_packed = w_packed.at[i, :fan_in, :fan_out].set(w)
            b_packed = b_packed.at[i, 0, :fan_out].set(b)

        self.w_packed = w_packed
        self.b_packed = b_packed

    def __call__(self, state):
        return mlp_forward(state, self.w_packed, self.b_packed,
                           self.layer_sizes, self.activations)


if __name__ == "__main__":
    # Small, module-consistent shapes.
    batch = 8
    state_size = 4
    control_size = 2
    hidden_size_list = [32, 32]
    activation_list = ["ReLU", "tanh", "Affine"]

    key = jax.random.PRNGKey(0)
    key, kx = jax.random.split(key)
    x = jax.random.normal(kx, (batch, state_size), dtype=jnp.float32)

    net = NeuralNetworkPallas(state_size, control_size, hidden_size_list,
                              activation_list, key)

    out = net(x)
    jax.block_until_ready(out)

    # Pure-JAX reference check (same unpadded params, same math).
    ref = x
    for (w, b), act in zip(net.params, net.activations):
        ref = ref @ w + b
        if act == "ReLU":
            ref = jnp.maximum(ref, 0.0)
        elif act == "sigmoid":
            ref = jax.nn.sigmoid(ref)
        elif act == "tanh":
            ref = jnp.tanh(ref)
    assert out.shape == (batch, control_size)
    assert jnp.allclose(out, ref, atol=1e-5, rtol=1e-5)

    print("KERNEL_OK")
</pallas_src>

<mosaic_0001>
module attributes {stable_mosaic.version = 11 : i64} {
  func.func @kernel(%arg0: memref<8x4xf32, #tpu.memory_space<vmem>>, %arg1: memref<3x32x32xf32, #tpu.memory_space<vmem>>, %arg2: memref<3x1x32xf32, #tpu.memory_space<vmem>>, %arg3: memref<8x2xf32, #tpu.memory_space<vmem>>) attributes {dimension_semantics = [], scalar_prefetch = 0 : i64, scratch_operands = 0 : i64, tpu.core_type = #tpu.core_type<tc>} {
    %c0 = arith.constant 0 : index
    %c0_0 = arith.constant 0 : index
    %0 = vector.load %arg0[%c0, %c0_0] : memref<8x4xf32, #tpu.memory_space<vmem>>, vector<8x4xf32>
    %c0_1 = arith.constant 0 : index
    %c0_2 = arith.constant 0 : index
    %c0_3 = arith.constant 0 : index
    %1 = vector.load %arg1[%c0_1, %c0_2, %c0_3] : memref<3x32x32xf32, #tpu.memory_space<vmem>>, vector<1x32x32xf32>
    %2 = vector.shape_cast %1 : vector<1x32x32xf32> to vector<32x32xf32>
    %3 = vector.extract_strided_slice %2 {offsets = [0, 0], sizes = [4, 32], strides = [1, 1]} : vector<32x32xf32> to vector<4x32xf32>
    %c0_4 = arith.constant 0 : index
    %c0_5 = arith.constant 0 : index
    %c0_6 = arith.constant 0 : index
    %4 = vector.load %arg2[%c0_4, %c0_5, %c0_6] : memref<3x1x32xf32, #tpu.memory_space<vmem>>, vector<1x1x32xf32>
    %5 = vector.shape_cast %4 : vector<1x1x32xf32> to vector<1x32xf32>
    %cst = arith.constant dense<0.000000e+00> : vector<8x32xf32>
    %6 = tpu.matmul %0, %3, %cst {dimension_numbers = #tpu.dot_dimension_numbers<[1], [0], [0], [1], [0, 0, 1, 1], [], []>} : vector<8x4xf32>, vector<4x32xf32>, vector<8x32xf32> -> vector<8x32xf32>
    %7 = vector.broadcast %5 : vector<1x32xf32> to vector<8x32xf32>
    %8 = arith.addf %6, %7 : vector<8x32xf32>
    %cst_7 = arith.constant 0.000000e+00 : f32
    %9 = vector.broadcast %cst_7 : f32 to vector<8x32xf32>
    %10 = arith.maximumf %8, %9 : vector<8x32xf32>
    %c1 = arith.constant 1 : index
    %c0_8 = arith.constant 0 : index
    %c0_9 = arith.constant 0 : index
    %11 = vector.load %arg1[%c1, %c0_8, %c0_9] : memref<3x32x32xf32, #tpu.memory_space<vmem>>, vector<1x32x32xf32>
    %12 = vector.shape_cast %11 : vector<1x32x32xf32> to vector<32x32xf32>
    %c1_10 = arith.constant 1 : index
    %c0_11 = arith.constant 0 : index
    %c0_12 = arith.constant 0 : index
    %13 = vector.load %arg2[%c1_10, %c0_11, %c0_12] : memref<3x1x32xf32, #tpu.memory_space<vmem>>, vector<1x1x32xf32>
    %14 = vector.shape_cast %13 : vector<1x1x32xf32> to vector<1x32xf32>
    %cst_13 = arith.constant dense<0.000000e+00> : vector<8x32xf32>
    %15 = tpu.matmul %10, %12, %cst_13 {dimension_numbers = #tpu.dot_dimension_numbers<[1], [0], [0], [1], [0, 0, 1, 1], [], []>} : vector<8x32xf32>, vector<32x32xf32>, vector<8x32xf32> -> vector<8x32xf32>
    %16 = vector.broadcast %14 : vector<1x32xf32> to vector<8x32xf32>
    %17 = arith.addf %15, %16 : vector<8x32xf32>
    %18 = math.tanh %17 : vector<8x32xf32>
    %c2 = arith.constant 2 : index
    %c0_14 = arith.constant 0 : index
    %c0_15 = arith.constant 0 : index
    %19 = vector.load %arg1[%c2, %c0_14, %c0_15] : memref<3x32x32xf32, #tpu.memory_space<vmem>>, vector<1x32x32xf32>
    %20 = vector.shape_cast %19 : vector<1x32x32xf32> to vector<32x32xf32>
    %21 = vector.extract_strided_slice %20 {offsets = [0, 0], sizes = [32, 2], strides = [1, 1]} : vector<32x32xf32> to vector<32x2xf32>
    %c2_16 = arith.constant 2 : index
    %c0_17 = arith.constant 0 : index
    %c0_18 = arith.constant 0 : index
    %22 = vector.load %arg2[%c2_16, %c0_17, %c0_18] : memref<3x1x32xf32, #tpu.memory_space<vmem>>, vector<1x1x32xf32>
    %23 = vector.shape_cast %22 : vector<1x1x32xf32> to vector<1x32xf32>
    %24 = vector.extract_strided_slice %23 {offsets = [0, 0], sizes = [1, 2], strides = [1, 1]} : vector<1x32xf32> to vector<1x2xf32>
    %cst_19 = arith.constant dense<0.000000e+00> : vector<8x2xf32>
    %25 = tpu.matmul %18, %21, %cst_19 {dimension_numbers = #tpu.dot_dimension_numbers<[1], [0], [0], [1], [0, 0, 1, 1], [], []>} : vector<8x32xf32>, vector<32x2xf32>, vector<8x2xf32> -> vector<8x2xf32>
    %26 = vector.broadcast %24 : vector<1x2xf32> to vector<8x2xf32>
    %27 = arith.addf %25, %26 : vector<8x2xf32>
    %c0_20 = arith.constant 0 : index
    %c0_21 = arith.constant 0 : index
    %28 = vector.load %arg3[%c0_20, %c0_21] : memref<8x2xf32, #tpu.memory_space<vmem>>, vector<8x2xf32>
    tpu.vector_store %arg3[%c0_20, %c0_21], %27 {strides = array<i32>} : memref<8x2xf32, #tpu.memory_space<vmem>>, vector<8x2xf32>,
    return
  }
}

</mosaic_0001>

<bundles_post_ra>
// kernel: mlp_forward.1
= control target key start
LH: loop header
LB: loop body
LE: loop exit
PB: predicated region body
PF: predicated region fallthrough
CT: control target
= control target key end

     0   :  { %8 = vsyncpa [#allocation3], 0  ;;  %s374_s12 = smov [#allocation2]   ;;  %s419_s0 = inlined_call_operand.vmem [shape: f32[8,4], index: 0, kind: input, shape index: {}]   ;;  %s420_s1 = inlined_call_operand.hbm [shape: f32[3,32,32], index: 1, kind: input, shape index: {}]   ;;  %s421_s2 = inlined_call_operand.vmem [shape: f32[3,1,32], index: 2, kind: input, shape index: {}]   ;;  %s422_s3 = inlined_call_operand.vmem [shape: f32[8,2], index: 3, kind: output, shape index: {}]  }
   0x1   :  { %s16_s13 = sshll.u32 %s374_s12, 4  ;;  %s17_s13 = int_to_ptr.vmem [resolvable:$true] %s16_s13 }
   0x2   :  { %s360_s14 = scalar_lea.vmem %s17_s13, 1536  ;;  %p365_p1 = scmp.lt.s32.totalorder %s17_s13, %s17_s13 }
   0x3   :  { %p361_p0 = scmp.ne.s32.totalorder %s17_s13, %s360_s14  ;;  %p366_p2 = scmp.lt.s32.totalorder %s360_s14, %s360_s14 }
   0x5   :  { %p367_p3 = por %p366_p2, %p365_p1 }
   0x7   :  { %p368_p4 = pnand %p367_p3, %p361_p0 }
   0x9   :  { %371 = shalt.err (!%p368_p4)
}
   0xa   :  { %s375_s15 = smov 128   ;;  %s376_s16 = smov 8  }
   0xb   :  { %22 = dma.hbm_to_vmem [thread:$0]  %s420_s1, 1536, %s17_s13, [#allocation3], %s375_s15, %s375_s15, %s376_s16  }
   0xc   :  { %372 = dma.done.wait [#allocation3], 1536  }
   0xd   :  { %373 = vsyncadd [#allocation3], 4294965760  ;;  %v377_v0 = vmov 0.0   ;;  %vm378_vm0 = vmmov 0   ;;  %vm41_vm1 = vcmask 1043456   ;;  %vm37_vm2 = vcmask 31744  }
   0xe   :  { %318 = vmatprep.subr.mxu0 %v377_v0  ;;  %320 = vmatprep.mubr.msk.f32.mxu0 %vm378_vm0, %v377_v0  ;;  %v29_v1 = vld [vmem:[#allocation2] sm:$0xff]  ;;  %v120_v3 = vld [vmem:[#allocation2 + $0x38] sm:$0xff]  ;;  %v119_v4 = vld [vmem:[#allocation2 + $0x30] sm:$0xff]  ;;  %vm129_vm3 = vcmask 261120   ;;  %vm290_vm4 = vcmask 15360  }
   0xf   :  { %323 = vmatprep.subr.mxu1 %v377_v0  ;;  %331 = vmatprep.mubr.msk.f32.mxu1 %vm378_vm0, %v377_v0  ;;  %v28_v2 = vld [vmem:[%s419_s0] sm:$0xff]  ;;  %v118_v5 = vld [vmem:[#allocation2 + $0x28] sm:$0xff]  ;;  %v208_v12 = vld [vmem:[#allocation2 + $0x58] sm:$0xff] }
  0x10   :  { %319 = vmatpush3.msk.msra.mxu0 %vm41_vm1, %v29_v1  ;;  %324 = vmatpush3.msra.mxu1 %v120_v3  ;;  %v117_v6 = vld [vmem:[#allocation2 + $0x20] sm:$0xff]  ;;  %v207_v13 = vld [vmem:[#allocation2 + $0x50] sm:$0xff]  ;;  %v206_v14 = vld [vmem:[#allocation2 + $0x48] sm:$0xff] }
  0x11   :  { %321 = vmatmul.mubr.msk.f32.vlgmr.msra.gmra.mxu0 %vm37_vm2, %v28_v2  ;;  %325 = vmatprep.subr.mxu1 %v377_v0  ;;  %v297_v7 = vld [vmem:[%s421_s2] ss:$0 sm:$0xff]  ;;  %v301_v16 = vld [vmem:[%s421_s2 + $0x1] ss:$0 sm:$0xff]  ;;  %v304_v21 = vld [vmem:[%s421_s2 + $0x2] ss:$0 sm:$0xff] }
  0x12   :  { %334 = vmatprep.subr.mxu0 %v377_v0  ;;  %342 = vmatprep.mubr.msk.f32.mxu0 %vm378_vm0, %v377_v0  ;;  %v205_v15 = vld [vmem:[#allocation2 + $0x40] sm:$0xff] }
  0x13   :  { %326 = vmatpush3.msra.mxu1 %v119_v4  ;;  %335 = vmatpush3.msra.mxu0 %v208_v12 }
  0x14   :  { %327 = vmatprep.subr.mxu1 %v377_v0  ;;  %336 = vmatprep.subr.mxu0 %v377_v0 }
  0x15   :  { %328 = vmatpush3.msra.mxu1 %v118_v5  ;;  %337 = vmatpush3.msra.mxu0 %v207_v13 }
  0x16   :  { %329 = vmatprep.subr.mxu1 %v377_v0  ;;  %338 = vmatprep.subr.mxu0 %v377_v0 }
  0x17   :  { %330 = vmatpush3.msra.mxu1 %v117_v6  ;;  %339 = vmatpush3.msra.mxu0 %v206_v14 }
  0x18   :  { %340 = vmatprep.subr.mxu0 %v377_v0 }
  0x19   :  { %341 = vmatpush3.msra.mxu0 %v205_v15 }
  0xd1   :  { %v111_v8 = vpop.f32.mrf.mxu0 }
  0xd2   :  { %v112_v9 = vadd.f32 %v297_v7, %v111_v8 }
  0xd3   :  { %v322_v10 = vpop.f32.mrf.mxu0 }
  0xd4   :  { %v115_v11 = vmax.f32 %v112_v9, 0.0 }
  0xd6   :  { %332 = vmatmul.mubr.msk.f32.vlgmr.msra.gmra.mxu1 %vm129_vm3, %v115_v11 }
 0x196   :  { %v199_v17 = vpop.f32.mrf.mxu1 }
 0x197   :  { %v200_v18 = vadd.f32 %v301_v16, %v199_v17 }
 0x198   :  { %v333_v19 = vpop.f32.mrf.mxu1 }
 0x199   :  { %350 = vtanh.f32 %v200_v18 }
 0x1a6   :  { %v351_v20 = vpop.eup %350 }
 0x1a7   :  { %343 = vmatmul.mubr.msk.f32.vlgmr.msra.gmra.mxu0 %vm129_vm3, %v351_v20 }
 0x267   :  { %v286_v22 = vpop.f32.mrf.mxu0 }
 0x268   :  { %v287_v23 = vadd.f32 %v304_v21, %v286_v22 }
 0x269   :  { %v344_v24 = vpop.f32.mrf.mxu0 }
 0x26a   :  { %291 = vst.msk [vmem:[%s422_s3] sm:$0xff] %vm290_vm4, %v287_v23 }
 0x26b   :  { %296 = vsyncpa [#allocation3], 1 }

</bundles_post_ra>
